<compile_context>
chip_gen: v7x
topology: tpu7x:2x2x1
jax: 0.10.0
libtpu: 0.0.40
codegen_flags: <defaults>
</compile_context>

<pallas_src>
import functools

import jax
import jax.numpy as jnp
import numpy as np
from jax.experimental import pallas as pl
from jax.experimental.pallas import tpu as pltpu


def _round_up(x, m):
    return ((x + m - 1) // m) * m


def _fc_kernel(x_ref, w_ref, b_ref, o_ref, acc_ref, *, weight_gain):
    """One (tm, tn) output tile, accumulated over the K grid axis."""
    k = pl.program_id(2)

    @pl.when(k == 0)
    def _():
        acc_ref[...] = jnp.zeros_like(acc_ref)

    # MXU matmul on a non-transposed RHS; f32 accumulate.
    acc_ref[...] += jnp.dot(
        x_ref[...], w_ref[...], preferred_element_type=jnp.float32
    )

    @pl.when(k == pl.num_programs(2) - 1)
    def _():
        # Apply the (static) weight gain to the accumulator (tm*tn ops instead
        # of rescaling every weight tile), then fused bias add.
        out = acc_ref[...] * jnp.float32(weight_gain) + b_ref[...].astype(jnp.float32)
        o_ref[...] = out.astype(o_ref.dtype)


def fully_connected(x, weight, bias, weight_gain, *, tm=256, tn=256, tk=512):
    """y = x @ (weight * weight_gain).T + bias, matching the PyTorch module.

    x: (..., in_features); weight: (out_features, in_features); bias: (out_features,) or None.
    """
    orig_shape = x.shape
    out_features, in_features = weight.shape
    x2d = x.reshape(-1, in_features)
    m = x2d.shape[0]

    if bias is None:
        bias = jnp.zeros((out_features,), dtype=x2d.dtype)

    # One-time layout work done by XLA outside the kernel: transpose the weight
    # to (K, N) and zero-pad all operands to lane/sublane-aligned tile multiples.
    w_kn = weight.T  # (K, N)

    tm_eff = min(tm, _round_up(m, 8))             # sublane-aligned M tile
    tk_eff = min(tk, _round_up(in_features, 128))  # lane-aligned K tile
    tn_eff = min(tn, _round_up(out_features, 128))  # lane-dense N tile

    mp = _round_up(m, tm_eff)
    kp = _round_up(in_features, tk_eff)
    np_pad = _round_up(out_features, tn_eff)

    x_p = jnp.pad(x2d, ((0, mp - m), (0, kp - in_features)))
    w_p = jnp.pad(w_kn, ((0, kp - in_features), (0, np_pad - out_features)))
    b_p = jnp.pad(bias.reshape(1, out_features), ((0, 0), (0, np_pad - out_features)))

    grid = (mp // tm_eff, np_pad // tn_eff, kp // tk_eff)

    kernel = functools.partial(_fc_kernel, weight_gain=float(weight_gain))

    out_p = pl.pallas_call(
        kernel,
        out_shape=jax.ShapeDtypeStruct((mp, np_pad), x2d.dtype),
        grid_spec=pltpu.PrefetchScalarGridSpec(
            num_scalar_prefetch=0,
            grid=grid,
            in_specs=[
                pl.BlockSpec((tm_eff, tk_eff), lambda i, j, k: (i, k)),   # x tile
                pl.BlockSpec((tk_eff, tn_eff), lambda i, j, k: (k, j)),   # w (K,N) tile
                pl.BlockSpec((1, tn_eff), lambda i, j, k: (0, j)),        # bias tile
            ],
            out_specs=pl.BlockSpec((tm_eff, tn_eff), lambda i, j, k: (i, j)),
            scratch_shapes=[pltpu.VMEM((tm_eff, tn_eff), jnp.float32)],
        ),
        compiler_params=pltpu.CompilerParams(
            dimension_semantics=("parallel", "parallel", "arbitrary"),
        ),
    )(x_p, w_p, b_p)

    out = out_p[:m, :out_features]
    return out.reshape(*orig_shape[:-1], out_features)


def _check(x, weight, bias, weight_gain, rtol, atol):
    y = jax.block_until_ready(fully_connected(x, weight, bias, weight_gain))
    # Reference in float64 on the host (covers any MXU precision mode).
    x64 = np.asarray(x, dtype=np.float64).reshape(-1, weight.shape[1])
    w64 = np.asarray(weight, dtype=np.float64)
    b64 = np.asarray(bias, dtype=np.float64)
    y_ref = (x64 @ (w64 * float(weight_gain)).T + b64).reshape(
        *x.shape[:-1], weight.shape[0]
    )
    np.testing.assert_allclose(np.asarray(y, dtype=np.float64), y_ref,
                               rtol=rtol, atol=atol)


if __name__ == "__main__":
    key = jax.random.PRNGKey(0)
    k1, k2, k3, k4 = jax.random.split(key, 4)

    # --- Small shape consistent with the module (batch=2, seq=8, hidden=32 -> 64) ---
    in_f, out_f, lr_mult = 32, 64, 1.0
    weight = jax.random.uniform(k1, (out_f, in_f), minval=-1.0 / lr_mult,
                                maxval=1.0 / lr_mult, dtype=jnp.float32)
    bias = jnp.zeros((out_f,), dtype=jnp.float32)
    gain = lr_mult / np.sqrt(in_f)
    x = jax.random.normal(k2, (2, 8, in_f), dtype=jnp.float32)
    _check(x, weight, bias, gain, rtol=2e-2, atol=2e-2)

    # --- Larger shape exercising M/N tiling, K accumulation and N/K padding ---
    in_f2, out_f2, m2 = 640, 320, 512
    weight2 = jax.random.uniform(k3, (out_f2, in_f2), minval=-1.0, maxval=1.0,
                                 dtype=jnp.float32)
    bias2 = jax.random.normal(k4, (out_f2,), dtype=jnp.float32) * 0.1
    gain2 = 1.0 / np.sqrt(in_f2)
    x2 = jax.random.normal(jax.random.PRNGKey(1), (m2, in_f2), dtype=jnp.float32)
    _check(x2, weight2, bias2, gain2, rtol=2e-2, atol=2e-2)

    print("KERNEL_OK")
</pallas_src>

<mosaic_0001>
module attributes {stable_mosaic.version = 11 : i64} {
  func.func @_fc_kernel(%arg0: i32, %arg1: i32, %arg2: i32, %arg3: memref<16x128xf32, #tpu.memory_space<vmem>>, %arg4: memref<128x128xf32, #tpu.memory_space<vmem>>, %arg5: memref<1x128xf32, #tpu.memory_space<vmem>>, %arg6: memref<16x128xf32, #tpu.memory_space<vmem>>, %arg7: memref<16x128xf32, #tpu.memory_space<vmem>>) attributes {dimension_semantics = [#tpu.dimension_semantics<parallel>, #tpu.dimension_semantics<parallel>, #tpu.dimension_semantics<arbitrary>], iteration_bounds = array<i64: 1, 1, 1>, scalar_prefetch = 0 : i64, scratch_operands = 1 : i64, tpu.core_type = #tpu.core_type<tc>, window_params = [{transform_indices = @transform_0, window_bounds = array<i64: 16, 128>}, {transform_indices = @transform_1, window_bounds = array<i64: 128, 128>}, {transform_indices = @transform_2, window_bounds = array<i64: 1, 128>}, {transform_indices = @transform_3, window_bounds = array<i64: 16, 128>}]} {
    %c0_i32 = arith.constant 0 : i32
    %0 = arith.cmpi eq, %arg2, %c0_i32 : i32
    %1 = arith.extui %0 : i1 to i32
    %c0_i32_0 = arith.constant 0 : i32
    %2 = arith.cmpi ne, %1, %c0_i32_0 : i32
    scf.if %2 {
      %cst_10 = arith.constant 0.000000e+00 : f32
      %12 = vector.broadcast %cst_10 : f32 to vector<16x128xf32>
      %c0_11 = arith.constant 0 : index
      %c0_12 = arith.constant 0 : index
      %13 = vector.load %arg7[%c0_11, %c0_12] : memref<16x128xf32, #tpu.memory_space<vmem>>, vector<16x128xf32>
      tpu.vector_store %arg7[%c0_11, %c0_12], %12 {strides = array<i32>} : memref<16x128xf32, #tpu.memory_space<vmem>>, vector<16x128xf32>,
    } else {
    }
    %c0 = arith.constant 0 : index
    %c0_1 = arith.constant 0 : index
    %3 = vector.load %arg7[%c0, %c0_1] : memref<16x128xf32, #tpu.memory_space<vmem>>, vector<16x128xf32>
    %c0_2 = arith.constant 0 : index
    %c0_3 = arith.constant 0 : index
    %4 = vector.load %arg3[%c0_2, %c0_3] : memref<16x128xf32, #tpu.memory_space<vmem>>, vector<16x128xf32>
    %c0_4 = arith.constant 0 : index
    %c0_5 = arith.constant 0 : index
    %5 = vector.load %arg4[%c0_4, %c0_5] : memref<128x128xf32, #tpu.memory_space<vmem>>, vector<128x128xf32>
    %cst = arith.constant dense<0.000000e+00> : vector<16x128xf32>
    %6 = tpu.matmul %4, %5, %cst {dimension_numbers = #tpu.dot_dimension_numbers<[1], [0], [0], [1], [0, 0, 1, 1], [], []>} : vector<16x128xf32>, vector<128x128xf32>, vector<16x128xf32> -> vector<16x128xf32>
    %7 = arith.addf %3, %6 : vector<16x128xf32>
    %c0_6 = arith.constant 0 : index
    %c0_7 = arith.constant 0 : index
    %8 = vector.load %arg7[%c0_6, %c0_7] : memref<16x128xf32, #tpu.memory_space<vmem>>, vector<16x128xf32>
    tpu.vector_store %arg7[%c0_6, %c0_7], %7 {strides = array<i32>} : memref<16x128xf32, #tpu.memory_space<vmem>>, vector<16x128xf32>,
    %c0_i32_8 = arith.constant 0 : i32
    %9 = arith.cmpi eq, %arg2, %c0_i32_8 : i32
    %10 = arith.extui %9 : i1 to i32
    %c0_i32_9 = arith.constant 0 : i32
    %11 = arith.cmpi ne, %10, %c0_i32_9 : i32
    scf.if %11 {
      %c0_10 = arith.constant 0 : index
      %c0_11 = arith.constant 0 : index
      %12 = vector.load %arg7[%c0_10, %c0_11] : memref<16x128xf32, #tpu.memory_space<vmem>>, vector<16x128xf32>
      %cst_12 = arith.constant 0.176776692 : f32
      %13 = vector.broadcast %cst_12 : f32 to vector<16x128xf32>
      %14 = arith.mulf %12, %13 : vector<16x128xf32>
      %c0_13 = arith.constant 0 : index
      %c0_14 = arith.constant 0 : index
      %15 = vector.load %arg5[%c0_13, %c0_14] : memref<1x128xf32, #tpu.memory_space<vmem>>, vector<1x128xf32>
      %16 = vector.broadcast %15 : vector<1x128xf32> to vector<16x128xf32>
      %17 = arith.addf %14, %16 : vector<16x128xf32>
      %c0_15 = arith.constant 0 : index
      %c0_16 = arith.constant 0 : index
      %18 = vector.load %arg6[%c0_15, %c0_16] : memref<16x128xf32, #tpu.memory_space<vmem>>, vector<16x128xf32>
      tpu.vector_store %arg6[%c0_15, %c0_16], %17 {strides = array<i32>} : memref<16x128xf32, #tpu.memory_space<vmem>>, vector<16x128xf32>,
    } else {
    }
    return
  }
  func.func @transform_0(%arg0: i32, %arg1: i32, %arg2: i32) -> (i32, i32) {
    %c0_i32 = arith.constant 0 : i32
    return %arg0, %arg2 : i32, i32
  }
  func.func @transform_1(%arg0: i32, %arg1: i32, %arg2: i32) -> (i32, i32) {
    %c0_i32 = arith.constant 0 : i32
    return %arg2, %arg1 : i32, i32
  }
  func.func @transform_2(%arg0: i32, %arg1: i32, %arg2: i32) -> (i32, i32) {
    %c0_i32 = arith.constant 0 : i32
    %c0_i32_0 = arith.constant 0 : i32
    return %c0_i32, %arg1 : i32, i32
  }
  func.func @transform_3(%arg0: i32, %arg1: i32, %arg2: i32) -> (i32, i32) {
    %c0_i32 = arith.constant 0 : i32
    return %arg0, %arg1 : i32, i32
  }
}

</mosaic_0001>

<bundles_post_ra>
// kernel: tpu_custom_call.1
= control target key start
LH: loop header
LB: loop body
LE: loop exit
PB: predicated region body
PF: predicated region fallthrough
CT: control target
= control target key end

     0   :  { %8 = vsyncpa [#allocation4], 0  ;;  %s420_s0 = inlined_call_operand.hbm [shape: f32[16,128], index: 0, kind: input, shape index: {}]   ;;  %s421_s1 = inlined_call_operand.hbm [shape: f32[128,128], index: 1, kind: input, shape index: {}]   ;;  %s422_s2 = inlined_call_operand.vmem [shape: f32[1,128], index: 2, kind: input, shape index: {}]   ;;  %s423_s3 = inlined_call_operand.hbm [shape: f32[16,128], index: 3, kind: output, shape index: {}]  }
   0x1   :  { %9 = vsyncpa [#allocation7], 0 }
   0x2   :  { %10 = vsyncpa [#allocation5], 0  ;;  %s347_s12 = smov [#allocation3]   ;;  %s275_s16 = scalar_lea.hbm %s420_s0, 256 }
   0x3   :  { %s16_s13 = sshll.u32 %s347_s12, 4  ;;  %p276_p0 = scmp.ne.s32.totalorder %s420_s0, %s275_s16  ;;  %s17_s13 = int_to_ptr.vmem [resolvable:$true] %s16_s13 }
   0x4   :  { %p279_p1 = scmp.lt.u32.totalorder %s275_s16, %s420_s0 }
   0x6   :  { %p281_p2 = pnand %p279_p1, %p276_p0 }
   0x8   :  { %284 = shalt.err (!%p281_p2)
}
   0x9   :  { %s285_s21 = scalar_lea.vmem %s17_s13, 256  ;;  %p290_p4 = scmp.lt.s32.totalorder %s17_s13, %s17_s13 }
   0xa   :  { %p286_p3 = scmp.ne.s32.totalorder %s17_s13, %s285_s21  ;;  %p291_p5 = scmp.lt.s32.totalorder %s285_s21, %s285_s21 }
   0xc   :  { %p292_p6 = por %p291_p5, %p290_p4 }
   0xe   :  { %p293_p7 = pnand %p292_p6, %p286_p3 }
  0x10   :  { %296 = shalt.err (!%p293_p7)
}
  0x11   :  { %s348_s22 = smov 128   ;;  %s349_s23 = smov 8  }
  0x12   :  { %22 = dma.hbm_to_vmem [thread:$0]  %s420_s0, 256, %s17_s13, [#allocation4], %s348_s22, %s348_s22, %s349_s23  }
  0x13   :  { %s350_s26 = smov [#allocation6]   ;;  %s297_s30 = scalar_lea.hbm %s421_s1, 2048 }
  0x14   :  { %s28_s27 = sshll.u32 %s350_s26, 4  ;;  %p298_p8 = scmp.ne.s32.totalorder %s421_s1, %s297_s30  ;;  %s29_s27 = int_to_ptr.vmem [resolvable:$true] %s28_s27 }
  0x15   :  { %p301_p9 = scmp.lt.u32.totalorder %s297_s30, %s421_s1 }
  0x17   :  { %p303_p10 = pnand %p301_p9, %p298_p8 }
  0x19   :  { %306 = shalt.err (!%p303_p10)
}
  0x1a   :  { %s307_s8 = scalar_lea.vmem %s29_s27, 2048  ;;  %p312_p12 = scmp.lt.s32.totalorder %s29_s27, %s29_s27 }
  0x1b   :  { %p308_p11 = scmp.ne.s32.totalorder %s29_s27, %s307_s8  ;;  %p313_p13 = scmp.lt.s32.totalorder %s307_s8, %s307_s8 }
  0x1d   :  { %p314_p0 = por %p313_p13, %p312_p12 }
  0x1f   :  { %p315_p1 = pnand %p314_p0, %p308_p11 }
  0x21   :  { %318 = shalt.err (!%p315_p1)
}
  0x22   :  { %34 = dma.hbm_to_vmem [thread:$0]  %s421_s1, 2048, %s29_s27, [#allocation7], %s348_s22, %s348_s22, %s349_s23  }
  0x23   :  { %341 = dma.done.wait [#allocation4], 256  }
  0x24   :  { %342 = vsyncadd [#allocation4], 4294967040 }
  0x25   :  { %343 = dma.done.wait [#allocation7], 2048  }
  0x26   :  { %344 = vsyncadd [#allocation7], 4294965248  ;;  %v53_v0 = vld [vmem:[#allocation6] sm:$0xff]  ;;  %v54_v1 = vld [vmem:[#allocation6 + $0x8] sm:$0xff]  ;;  %s351_s11 = smov [#allocation8]  }
  0x27   :  { %v55_v2 = vld [vmem:[#allocation6 + $0x10] sm:$0xff]  ;;  %v238_v3 = vpack.c.bf16 %v54_v1, %v53_v0  ;;  %v56_v4 = vld [vmem:[#allocation6 + $0x18] sm:$0xff]  ;;  %v57_v6 = vld [vmem:[#allocation6 + $0x20] sm:$0xff]  ;;  %s171_s12 = sshll.u32 %s351_s11, 4  ;;  %s172_s12 = int_to_ptr.vmem [resolvable:$true] %s171_s12 }
  0x28   :  { %v242_v5 = vpack.c.bf16 %v56_v4, %v55_v2  ;;  %v58_v7 = vld [vmem:[#allocation6 + $0x28] sm:$0xff]  ;;  %v51_v9 = vld [vmem:[#allocation3] sm:$0xff]  ;;  %v60_v11 = vld [vmem:[#allocation6 + $0x38] sm:$0xff]  ;;  %s319_s13 = scalar_lea.vmem %s172_s12, 256  ;;  %p324_p3 = scmp.lt.s32.totalorder %s172_s12, %s172_s12 }
  0x29   :  { %239 = vmatprep.subr.bf16.mxu0 %v238_v3  ;;  %v246_v8 = vpack.c.bf16 %v58_v7, %v57_v6  ;;  %v59_v10 = vld [vmem:[#allocation6 + $0x30] sm:$0xff]  ;;  %235 = vmatprep.mubr.f32.mxu0 %v51_v9  ;;  %v61_v13 = vld [vmem:[#allocation6 + $0x40] sm:$0xff]  ;;  %v62_v14 = vld [vmem:[#allocation6 + $0x48] sm:$0xff]  ;;  %p320_p2 = scmp.ne.s32.totalorder %s172_s12, %s319_s13  ;;  %p325_p4 = scmp.lt.s32.totalorder %s319_s13, %s319_s13 }
  0x2a   :  { %241 = vmatpush3.bf16.msra.mxu0 %v238_v3  ;;  %v250_v12 = vpack.c.bf16 %v60_v11, %v59_v10  ;;  %v254_v15 = vpack.c.bf16 %v62_v14, %v61_v13  ;;  %v63_v16 = vld [vmem:[#allocation6 + $0x50] sm:$0xff]  ;;  %v64_v17 = vld [vmem:[#allocation6 + $0x58] sm:$0xff]  ;;  %v65_v19 = vld [vmem:[#allocation6 + $0x60] sm:$0xff] }
  0x2b   :  { %243 = vmatprep.subr.bf16.mxu0 %v242_v5  ;;  %v258_v18 = vpack.c.bf16 %v64_v17, %v63_v16  ;;  %v66_v20 = vld [vmem:[#allocation6 + $0x68] sm:$0xff]  ;;  %v67_v22 = vld [vmem:[#allocation6 + $0x70] sm:$0xff]  ;;  %v68_v23 = vld [vmem:[#allocation6 + $0x78] sm:$0xff]  ;;  %p326_p5 = por %p325_p4, %p324_p3 }
  0x2c   :  { %v262_v21 = vpack.c.bf16 %v66_v20, %v65_v19  ;;  %v266_v24 = vpack.c.bf16 %v68_v23, %v67_v22  ;;  %v52_v25 = vld [vmem:[#allocation3 + $0x8] sm:$0xff]  ;;  %v184_v27 = vld [vmem:[%s422_s2] ss:$0 sm:$0xff] }
  0x2d   :  { %p327_p6 = pnand %p326_p5, %p320_p2 }
  0x2e   :  { %245 = vmatpush3.bf16.msra.mxu0 %v242_v5 }
  0x2f   :  { %247 = vmatprep.subr.bf16.mxu0 %v246_v8 }
  0x32   :  { %249 = vmatpush3.bf16.msra.mxu0 %v246_v8 }
  0x33   :  { %251 = vmatprep.subr.bf16.mxu0 %v250_v12 }
  0x36   :  { %253 = vmatpush3.bf16.msra.mxu0 %v250_v12 }
  0x37   :  { %255 = vmatprep.subr.bf16.mxu0 %v254_v15 }
  0x3a   :  { %257 = vmatpush3.bf16.msra.mxu0 %v254_v15 }
  0x3b   :  { %259 = vmatprep.subr.bf16.mxu0 %v258_v18 }
  0x3e   :  { %261 = vmatpush3.bf16.msra.mxu0 %v258_v18 }
  0x3f   :  { %263 = vmatprep.subr.bf16.mxu0 %v262_v21 }
  0x42   :  { %265 = vmatpush3.bf16.msra.mxu0 %v262_v21 }
  0x43   :  { %267 = vmatprep.subr.bf16.mxu0 %v266_v24 }
  0x46   :  { %269 = vmatpush3.bf16.msra.mxu0 %v266_v24 }
  0x49   :  { %236 = vmatmul.mubr.f32.vlgmr.msra.gmra.mrb[0].mxu0 %v52_v25 }
 0x11c   :  { %v237_v26 = vpop.f32.mrb[0].mxu0 }
 0x11d   :  { %v154_v28 = vmul.f32 0.17677669, %v237_v26  ;;  %v135_v29 = vpop.f32.mrb[1].mxu0 }
 0x11e   :  { %v153_v30 = vmul.f32 0.17677669, %v135_v29 }
 0x11f   :  { %v163_v31 = vadd.f32 %v184_v27, %v154_v28 }
 0x120   :  { %v162_v32 = vadd.f32 %v184_v27, %v153_v30 }
 0x121   :  { %165 = vst [vmem:[#allocation8 + $0x8] sm:$0xff] %v163_v31 }
 0x122   :  { %164 = vst [vmem:[#allocation8] sm:$0xff] %v162_v32 }
 0x123   :  { %330 = shalt.err (!%p327_p6)
}
 0x124   :  { %s331_s2 = scalar_lea.hbm %s423_s3, 256 }
 0x125   :  { %p332_p7 = scmp.ne.s32.totalorder %s423_s3, %s331_s2  ;;  %p335_p8 = scmp.lt.u32.totalorder %s331_s2, %s423_s3 }
 0x127   :  { %p337_p9 = pnand %p335_p8, %p332_p7 }
 0x129   :  { %340 = shalt.err (!%p337_p9)
}
 0x12a   :  { %177 = dma.vmem_to_hbm [thread:$0]  %s172_s12, 256, %s423_s3, [#allocation5], %s348_s22, %s348_s22, %s349_s23  }
 0x12b   :  { %345 = dma.done.wait [#allocation5], 256  }
 0x12c   :  { %346 = vsyncadd [#allocation5], 4294967040 }
 0x12d   :  { %181 = vsyncpa [#allocation4], 1 }
 0x12e   :  { %182 = vsyncpa [#allocation7], 1 }
 0x12f   :  { %183 = vsyncpa [#allocation5], 1 }

</bundles_post_ra>
